<compile_context>
chip_gen: v6e
topology: v6e:2x2x1
jax: 0.10.0
libtpu: 0.0.40
codegen_flags: <defaults>
</compile_context>

<pallas_src>
import functools

import jax
import jax.numpy as jnp
import numpy as np
from jax.experimental import pallas as pl
from jax.experimental.pallas import tpu as pltpu

BN_EPS = 1e-5


def _make_qoe_kernel(n_layers: int, n_units: int, n_labels: int,
                     eps: float, inv_b: float):
    """Fused forward for one request block [B, F] -> [B, L]."""

    def kernel(*refs):
        x_ref = refs[0]
        w0_ref = refs[1]
        if n_layers > 0:
            wh_ref, wf_ref, vecs_ref, out_ref = refs[2:]
        else:
            wf_ref, vecs_ref, out_ref = refs[2:]
            wh_ref = None

        U, L = n_units, n_labels
        vecs = vecs_ref[...]  # [n_vecs, P] — one tiny load, sliced statically

        def bn_silu(h, layer_idx):
            gamma = vecs[2 * layer_idx: 2 * layer_idx + 1, :U]
            beta = vecs[2 * layer_idx + 1: 2 * layer_idx + 2, :U]
            # One-pass batch stats (biased variance, training-mode BN).
            s = jnp.sum(h, axis=0, keepdims=True)
            sq = jnp.sum(h * h, axis=0, keepdims=True)
            mean = s * inv_b
            var = sq * inv_b - mean * mean
            # Folded BN affine: h*scale + shift.
            scale = gamma * jax.lax.rsqrt(var + eps)
            shift = beta - scale * mean
            h = h * scale + shift
            # SiLU
            return h * jax.nn.sigmoid(h)

        h = x_ref[...].astype(jnp.float32)

        # First Linear (bias dropped: cancelled by BN mean subtraction).
        h = jnp.dot(h, w0_ref[...], preferred_element_type=jnp.float32)
        h = bn_silu(h, 0)

        # Hidden Linear->BN->SiLU blocks (biases dropped, same reason).
        for l in range(n_layers):
            h = jnp.dot(h, wh_ref[l], preferred_element_type=jnp.float32)
            h = bn_silu(h, l + 1)

        # Final Linear (bias kept) -> ReLU.
        bf_row = 2 * (n_layers + 1)
        bf = vecs[bf_row: bf_row + 1, :L]
        h = jnp.dot(h, wf_ref[...], preferred_element_type=jnp.float32) + bf
        out_ref[...] = jnp.maximum(h, 0.0).astype(out_ref.dtype)

    return kernel


def qoe_forward(x, w0, wh, wf, vecs, *, n_layers, n_units, n_labels):
    """x: [R, B, F] (R independent requests) -> [R, B, L]."""
    R, B, F = x.shape
    kernel = _make_qoe_kernel(n_layers, n_units, n_labels, BN_EPS, 1.0 / B)

    in_specs = [
        # activations: one request block per grid step (pipelined)
        pl.BlockSpec((None, B, F), lambda r: (r, 0, 0)),
        # parameters: constant block index -> VMEM-resident across the grid
        pl.BlockSpec((F, n_units), lambda r: (0, 0)),
    ]
    args = [x, w0]
    if n_layers > 0:
        in_specs.append(
            pl.BlockSpec((n_layers, n_units, n_units), lambda r: (0, 0, 0)))
        args.append(wh)
    in_specs += [
        pl.BlockSpec((n_units, n_labels), lambda r: (0, 0)),
        pl.BlockSpec(vecs.shape, lambda r: (0, 0)),
    ]
    args += [wf, vecs]

    return pl.pallas_call(
        kernel,
        out_shape=jax.ShapeDtypeStruct((R, B, n_labels), jnp.float32),
        grid=(R,),
        in_specs=in_specs,
        out_specs=pl.BlockSpec((None, B, n_labels), lambda r: (r, 0, 0)),
        compiler_params=pltpu.CompilerParams(
            dimension_semantics=("parallel",)),  # v7x: 2 TCs split the grid
    )(*args)


# ---------------------------------------------------------------------------
# Parameter init (PyTorch-Linear-style bounds) + packing for the kernel.
# ---------------------------------------------------------------------------
def init_params(key, n_features, n_labels, n_layers, n_units):
    layer_dims = [(n_features, n_units)] + [(n_units, n_units)] * n_layers

    def linear(k, fi, fo):
        kw, kb = jax.random.split(k)
        bound = 1.0 / np.sqrt(fi)
        w = jax.random.uniform(kw, (fi, fo), jnp.float32, -bound, bound)
        b = jax.random.uniform(kb, (fo,), jnp.float32, -bound, bound)
        return w, b

    layers = []
    for fi, fo in layer_dims:
        key, k1, k2, k3 = jax.random.split(key, 4)
        w, b = linear(k1, fi, fo)
        # Random-ish BN affine so the folded scale/shift path is exercised.
        gamma = 1.0 + 0.1 * jax.random.normal(k2, (fo,), jnp.float32)
        beta = 0.1 * jax.random.normal(k3, (fo,), jnp.float32)
        layers.append((w, b, gamma, beta))

    key, kf = jax.random.split(key)
    wf, bf = linear(kf, n_units, n_labels)
    return layers, wf, bf


def pack_params(layers, wf, bf, n_units, n_labels):
    """Pack weights/vectors into the kernel's 4 (or 3) inputs."""
    P = max(n_units, n_labels)
    w0 = layers[0][0]
    wh = (jnp.stack([w for (w, _, _, _) in layers[1:]], axis=0)
          if len(layers) > 1 else None)
    rows = []
    for (_, _, gamma, beta) in layers:          # pre-BN biases are dropped
        rows.append(jnp.pad(gamma, (0, P - gamma.shape[0])))
        rows.append(jnp.pad(beta, (0, P - beta.shape[0])))
    rows.append(jnp.pad(bf, (0, P - bf.shape[0])))   # final-layer bias kept
    vecs = jnp.stack(rows, axis=0)               # [2*(n_layers+1)+1, P]
    return w0, wh, wf, vecs


# ---------------------------------------------------------------------------
# Pure-JAX reference (matches the PyTorch module exactly, biases included).
# ---------------------------------------------------------------------------
def qoe_reference(x, layers, wf, bf):
    h = x.astype(jnp.float32)                    # [R, B, F]
    for (w, b, gamma, beta) in layers:
        h = h @ w + b
        mean = jnp.mean(h, axis=1, keepdims=True)
        var = jnp.mean((h - mean) ** 2, axis=1, keepdims=True)
        h = (h - mean) * jax.lax.rsqrt(var + BN_EPS) * gamma + beta
        h = h * jax.nn.sigmoid(h)
    return jnp.maximum(h @ wf + bf, 0.0)


if __name__ == "__main__":
    # Small shapes consistent with the module's forward.
    n_features, n_labels, n_layers, n_units = 16, 4, 2, 32
    n_requests, batch = 4, 8      # 4 independent forwards of batch 8 each

    key = jax.random.PRNGKey(0)
    kx, kp = jax.random.split(key)
    x = jax.random.normal(kx, (n_requests, batch, n_features), jnp.float32)

    layers, wf, bf = init_params(kp, n_features, n_labels, n_layers, n_units)
    w0, wh, wf_packed, vecs = pack_params(layers, wf, bf, n_units, n_labels)

    fwd = jax.jit(functools.partial(
        qoe_forward, n_layers=n_layers, n_units=n_units, n_labels=n_labels))
    out = fwd(x, w0, wh, wf_packed, vecs)
    jax.block_until_ready(out)

    ref = qoe_reference(x, layers, wf, bf)
    np.testing.assert_allclose(np.asarray(out), np.asarray(ref),
                               rtol=1e-4, atol=1e-4)

    print("KERNEL_OK")
</pallas_src>

<mosaic_0001>
module attributes {stable_mosaic.version = 11 : i64} {
  func.func @kernel(%arg0: i32, %arg1: memref<1x8x16xf32, #tpu.memory_space<vmem>>, %arg2: memref<16x32xf32, #tpu.memory_space<vmem>>, %arg3: memref<2x32x32xf32, #tpu.memory_space<vmem>>, %arg4: memref<32x4xf32, #tpu.memory_space<vmem>>, %arg5: memref<7x32xf32, #tpu.memory_space<vmem>>, %arg6: memref<1x8x4xf32, #tpu.memory_space<vmem>>) attributes {dimension_semantics = [#tpu.dimension_semantics<parallel>], iteration_bounds = array<i64: 4>, scalar_prefetch = 0 : i64, scratch_operands = 0 : i64, tpu.core_type = #tpu.core_type<tc>, window_params = [{transform_indices = @transform_0, window_bounds = array<i64: 1, 8, 16>}, {pipeline_mode = #tpu.pipeline_mode<synchronous>, transform_indices = @transform_1, window_bounds = array<i64: 16, 32>}, {pipeline_mode = #tpu.pipeline_mode<synchronous>, transform_indices = @transform_2, window_bounds = array<i64: 2, 32, 32>}, {pipeline_mode = #tpu.pipeline_mode<synchronous>, transform_indices = @transform_3, window_bounds = array<i64: 32, 4>}, {pipeline_mode = #tpu.pipeline_mode<synchronous>, transform_indices = @transform_4, window_bounds = array<i64: 7, 32>}, {transform_indices = @transform_5, window_bounds = array<i64: 1, 8, 4>}]} {
    %c0 = arith.constant 0 : index
    %c0_0 = arith.constant 0 : index
    %0 = vector.load %arg5[%c0, %c0_0] : memref<7x32xf32, #tpu.memory_space<vmem>>, vector<7x32xf32>
    %c0_1 = arith.constant 0 : index
    %c0_2 = arith.constant 0 : index
    %c0_3 = arith.constant 0 : index
    %1 = vector.load %arg1[%c0_1, %c0_2, %c0_3] : memref<1x8x16xf32, #tpu.memory_space<vmem>>, vector<1x8x16xf32>
    %2 = vector.shape_cast %1 : vector<1x8x16xf32> to vector<8x16xf32>
    %c0_4 = arith.constant 0 : index
    %c0_5 = arith.constant 0 : index
    %3 = vector.load %arg2[%c0_4, %c0_5] : memref<16x32xf32, #tpu.memory_space<vmem>>, vector<16x32xf32>
    %cst = arith.constant dense<0.000000e+00> : vector<8x32xf32>
    %4 = tpu.matmul %2, %3, %cst {dimension_numbers = #tpu.dot_dimension_numbers<[1], [0], [0], [1], [0, 0, 1, 1], [], []>} : vector<8x16xf32>, vector<16x32xf32>, vector<8x32xf32> -> vector<8x32xf32>
    %5 = vector.extract_strided_slice %0 {offsets = [0, 0], sizes = [1, 32], strides = [1, 1]} : vector<7x32xf32> to vector<1x32xf32>
    %6 = vector.extract_strided_slice %0 {offsets = [1, 0], sizes = [1, 32], strides = [1, 1]} : vector<7x32xf32> to vector<1x32xf32>
    %cst_6 = arith.constant dense<0.000000e+00> : vector<32xf32>
    %7 = vector.multi_reduction <add>, %4, %cst_6 [0] : vector<8x32xf32> to vector<32xf32>
    %8 = vector.shape_cast %7 : vector<32xf32> to vector<1x32xf32>
    %9 = arith.mulf %4, %4 : vector<8x32xf32>
    %cst_7 = arith.constant dense<0.000000e+00> : vector<32xf32>
    %10 = vector.multi_reduction <add>, %9, %cst_7 [0] : vector<8x32xf32> to vector<32xf32>
    %11 = vector.shape_cast %10 : vector<32xf32> to vector<1x32xf32>
    %cst_8 = arith.constant 1.250000e-01 : f32
    %12 = vector.broadcast %cst_8 : f32 to vector<1x32xf32>
    %13 = arith.mulf %8, %12 : vector<1x32xf32>
    %cst_9 = arith.constant 1.250000e-01 : f32
    %14 = vector.broadcast %cst_9 : f32 to vector<1x32xf32>
    %15 = arith.mulf %11, %14 : vector<1x32xf32>
    %16 = arith.mulf %13, %13 : vector<1x32xf32>
    %17 = arith.subf %15, %16 : vector<1x32xf32>
    %cst_10 = arith.constant 9.99999974E-6 : f32
    %18 = vector.broadcast %cst_10 : f32 to vector<1x32xf32>
    %19 = arith.addf %17, %18 : vector<1x32xf32>
    %20 = math.rsqrt %19 : vector<1x32xf32>
    %21 = arith.mulf %5, %20 : vector<1x32xf32>
    %22 = arith.mulf %21, %13 : vector<1x32xf32>
    %23 = arith.subf %6, %22 : vector<1x32xf32>
    %24 = vector.broadcast %21 : vector<1x32xf32> to vector<8x32xf32>
    %25 = arith.mulf %4, %24 : vector<8x32xf32>
    %26 = vector.broadcast %23 : vector<1x32xf32> to vector<8x32xf32>
    %27 = arith.addf %25, %26 : vector<8x32xf32>
    %28 = arith.negf %27 : vector<8x32xf32>
    %29 = math.exp %28 : vector<8x32xf32>
    %cst_11 = arith.constant 1.000000e+00 : f32
    %30 = vector.broadcast %cst_11 : f32 to vector<8x32xf32>
    %31 = arith.addf %30, %29 : vector<8x32xf32>
    %32 = arith.divf %30, %31 : vector<8x32xf32>
    %33 = arith.mulf %27, %32 : vector<8x32xf32>
    %c0_12 = arith.constant 0 : index
    %c0_13 = arith.constant 0 : index
    %c0_14 = arith.constant 0 : index
    %34 = vector.load %arg3[%c0_12, %c0_13, %c0_14] : memref<2x32x32xf32, #tpu.memory_space<vmem>>, vector<1x32x32xf32>
    %35 = vector.shape_cast %34 : vector<1x32x32xf32> to vector<32x32xf32>
    %cst_15 = arith.constant dense<0.000000e+00> : vector<8x32xf32>
    %36 = tpu.matmul %33, %35, %cst_15 {dimension_numbers = #tpu.dot_dimension_numbers<[1], [0], [0], [1], [0, 0, 1, 1], [], []>} : vector<8x32xf32>, vector<32x32xf32>, vector<8x32xf32> -> vector<8x32xf32>
    %37 = vector.extract_strided_slice %0 {offsets = [2, 0], sizes = [1, 32], strides = [1, 1]} : vector<7x32xf32> to vector<1x32xf32>
    %38 = vector.extract_strided_slice %0 {offsets = [3, 0], sizes = [1, 32], strides = [1, 1]} : vector<7x32xf32> to vector<1x32xf32>
    %cst_16 = arith.constant dense<0.000000e+00> : vector<32xf32>
    %39 = vector.multi_reduction <add>, %36, %cst_16 [0] : vector<8x32xf32> to vector<32xf32>
    %40 = vector.shape_cast %39 : vector<32xf32> to vector<1x32xf32>
    %41 = arith.mulf %36, %36 : vector<8x32xf32>
    %cst_17 = arith.constant dense<0.000000e+00> : vector<32xf32>
    %42 = vector.multi_reduction <add>, %41, %cst_17 [0] : vector<8x32xf32> to vector<32xf32>
    %43 = vector.shape_cast %42 : vector<32xf32> to vector<1x32xf32>
    %cst_18 = arith.constant 1.250000e-01 : f32
    %44 = vector.broadcast %cst_18 : f32 to vector<1x32xf32>
    %45 = arith.mulf %40, %44 : vector<1x32xf32>
    %cst_19 = arith.constant 1.250000e-01 : f32
    %46 = vector.broadcast %cst_19 : f32 to vector<1x32xf32>
    %47 = arith.mulf %43, %46 : vector<1x32xf32>
    %48 = arith.mulf %45, %45 : vector<1x32xf32>
    %49 = arith.subf %47, %48 : vector<1x32xf32>
    %cst_20 = arith.constant 9.99999974E-6 : f32
    %50 = vector.broadcast %cst_20 : f32 to vector<1x32xf32>
    %51 = arith.addf %49, %50 : vector<1x32xf32>
    %52 = math.rsqrt %51 : vector<1x32xf32>
    %53 = arith.mulf %37, %52 : vector<1x32xf32>
    %54 = arith.mulf %53, %45 : vector<1x32xf32>
    %55 = arith.subf %38, %54 : vector<1x32xf32>
    %56 = vector.broadcast %53 : vector<1x32xf32> to vector<8x32xf32>
    %57 = arith.mulf %36, %56 : vector<8x32xf32>
    %58 = vector.broadcast %55 : vector<1x32xf32> to vector<8x32xf32>
    %59 = arith.addf %57, %58 : vector<8x32xf32>
    %60 = arith.negf %59 : vector<8x32xf32>
    %61 = math.exp %60 : vector<8x32xf32>
    %cst_21 = arith.constant 1.000000e+00 : f32
    %62 = vector.broadcast %cst_21 : f32 to vector<8x32xf32>
    %63 = arith.addf %62, %61 : vector<8x32xf32>
    %64 = arith.divf %62, %63 : vector<8x32xf32>
    %65 = arith.mulf %59, %64 : vector<8x32xf32>
    %c1 = arith.constant 1 : index
    %c0_22 = arith.constant 0 : index
    %c0_23 = arith.constant 0 : index
    %66 = vector.load %arg3[%c1, %c0_22, %c0_23] : memref<2x32x32xf32, #tpu.memory_space<vmem>>, vector<1x32x32xf32>
    %67 = vector.shape_cast %66 : vector<1x32x32xf32> to vector<32x32xf32>
    %cst_24 = arith.constant dense<0.000000e+00> : vector<8x32xf32>
    %68 = tpu.matmul %65, %67, %cst_24 {dimension_numbers = #tpu.dot_dimension_numbers<[1], [0], [0], [1], [0, 0, 1, 1], [], []>} : vector<8x32xf32>, vector<32x32xf32>, vector<8x32xf32> -> vector<8x32xf32>
    %69 = vector.extract_strided_slice %0 {offsets = [4, 0], sizes = [1, 32], strides = [1, 1]} : vector<7x32xf32> to vector<1x32xf32>
    %70 = vector.extract_strided_slice %0 {offsets = [5, 0], sizes = [1, 32], strides = [1, 1]} : vector<7x32xf32> to vector<1x32xf32>
    %cst_25 = arith.constant dense<0.000000e+00> : vector<32xf32>
    %71 = vector.multi_reduction <add>, %68, %cst_25 [0] : vector<8x32xf32> to vector<32xf32>
    %72 = vector.shape_cast %71 : vector<32xf32> to vector<1x32xf32>
    %73 = arith.mulf %68, %68 : vector<8x32xf32>
    %cst_26 = arith.constant dense<0.000000e+00> : vector<32xf32>
    %74 = vector.multi_reduction <add>, %73, %cst_26 [0] : vector<8x32xf32> to vector<32xf32>
    %75 = vector.shape_cast %74 : vector<32xf32> to vector<1x32xf32>
    %cst_27 = arith.constant 1.250000e-01 : f32
    %76 = vector.broadcast %cst_27 : f32 to vector<1x32xf32>
    %77 = arith.mulf %72, %76 : vector<1x32xf32>
    %cst_28 = arith.constant 1.250000e-01 : f32
    %78 = vector.broadcast %cst_28 : f32 to vector<1x32xf32>
    %79 = arith.mulf %75, %78 : vector<1x32xf32>
    %80 = arith.mulf %77, %77 : vector<1x32xf32>
    %81 = arith.subf %79, %80 : vector<1x32xf32>
    %cst_29 = arith.constant 9.99999974E-6 : f32
    %82 = vector.broadcast %cst_29 : f32 to vector<1x32xf32>
    %83 = arith.addf %81, %82 : vector<1x32xf32>
    %84 = math.rsqrt %83 : vector<1x32xf32>
    %85 = arith.mulf %69, %84 : vector<1x32xf32>
    %86 = arith.mulf %85, %77 : vector<1x32xf32>
    %87 = arith.subf %70, %86 : vector<1x32xf32>
    %88 = vector.broadcast %85 : vector<1x32xf32> to vector<8x32xf32>
    %89 = arith.mulf %68, %88 : vector<8x32xf32>
    %90 = vector.broadcast %87 : vector<1x32xf32> to vector<8x32xf32>
    %91 = arith.addf %89, %90 : vector<8x32xf32>
    %92 = arith.negf %91 : vector<8x32xf32>
    %93 = math.exp %92 : vector<8x32xf32>
    %cst_30 = arith.constant 1.000000e+00 : f32
    %94 = vector.broadcast %cst_30 : f32 to vector<8x32xf32>
    %95 = arith.addf %94, %93 : vector<8x32xf32>
    %96 = arith.divf %94, %95 : vector<8x32xf32>
    %97 = arith.mulf %91, %96 : vector<8x32xf32>
    %98 = vector.extract_strided_slice %0 {offsets = [6, 0], sizes = [1, 4], strides = [1, 1]} : vector<7x32xf32> to vector<1x4xf32>
    %c0_31 = arith.constant 0 : index
    %c0_32 = arith.constant 0 : index
    %99 = vector.load %arg4[%c0_31, %c0_32] : memref<32x4xf32, #tpu.memory_space<vmem>>, vector<32x4xf32>
    %cst_33 = arith.constant dense<0.000000e+00> : vector<8x4xf32>
    %100 = tpu.matmul %97, %99, %cst_33 {dimension_numbers = #tpu.dot_dimension_numbers<[1], [0], [0], [1], [0, 0, 1, 1], [], []>} : vector<8x32xf32>, vector<32x4xf32>, vector<8x4xf32> -> vector<8x4xf32>
    %101 = vector.broadcast %98 : vector<1x4xf32> to vector<8x4xf32>
    %102 = arith.addf %100, %101 : vector<8x4xf32>
    %cst_34 = arith.constant 0.000000e+00 : f32
    %103 = vector.broadcast %cst_34 : f32 to vector<8x4xf32>
    %104 = arith.maximumf %102, %103 : vector<8x4xf32>
    %c0_35 = arith.constant 0 : index
    %c0_36 = arith.constant 0 : index
    %c0_37 = arith.constant 0 : index
    %105 = vector.load %arg6[%c0_35, %c0_36, %c0_37] : memref<1x8x4xf32, #tpu.memory_space<vmem>>, vector<1x8x4xf32>
    %106 = vector.shape_cast %105 : vector<1x8x4xf32> to vector<8x4xf32>
    %107 = vector.shape_cast %104 : vector<8x4xf32> to vector<1x8x4xf32>
    tpu.vector_store %arg6[%c0_35, %c0_36, %c0_37], %107 {strides = array<i32>} : memref<1x8x4xf32, #tpu.memory_space<vmem>>, vector<1x8x4xf32>,
    return
  }
  func.func @transform_0(%arg0: i32) -> (i32, i32, i32) {
    %c0_i32 = arith.constant 0 : i32
    %c0_i32_0 = arith.constant 0 : i32
    %c0_i32_1 = arith.constant 0 : i32
    return %arg0, %c0_i32, %c0_i32_0 : i32, i32, i32
  }
  func.func @transform_1(%arg0: i32) -> (i32, i32) {
    %c0_i32 = arith.constant 0 : i32
    %c0_i32_0 = arith.constant 0 : i32
    %c0_i32_1 = arith.constant 0 : i32
    return %c0_i32, %c0_i32_0 : i32, i32
  }
  func.func @transform_2(%arg0: i32) -> (i32, i32, i32) {
    %c0_i32 = arith.constant 0 : i32
    %c0_i32_0 = arith.constant 0 : i32
    %c0_i32_1 = arith.constant 0 : i32
    %c0_i32_2 = arith.constant 0 : i32
    return %c0_i32, %c0_i32_0, %c0_i32_1 : i32, i32, i32
  }
  func.func @transform_3(%arg0: i32) -> (i32, i32) {
    %c0_i32 = arith.constant 0 : i32
    %c0_i32_0 = arith.constant 0 : i32
    %c0_i32_1 = arith.constant 0 : i32
    return %c0_i32, %c0_i32_0 : i32, i32
  }
  func.func @transform_4(%arg0: i32) -> (i32, i32) {
    %c0_i32 = arith.constant 0 : i32
    %c0_i32_0 = arith.constant 0 : i32
    %c0_i32_1 = arith.constant 0 : i32
    return %c0_i32, %c0_i32_0 : i32, i32
  }
  func.func @transform_5(%arg0: i32) -> (i32, i32, i32) {
    %c0_i32 = arith.constant 0 : i32
    %c0_i32_0 = arith.constant 0 : i32
    %c0_i32_1 = arith.constant 0 : i32
    return %arg0, %c0_i32, %c0_i32_0 : i32, i32, i32
  }
}

</mosaic_0001>

<bundles_post_ra>
// kernel: qoe_forward.1
= control target key start
LH: loop header
LB: loop body
LE: loop exit
PB: predicated region body
PF: predicated region fallthrough
CT: control target
= control target key end

     0   :  { %10 = vsyncpa [#allocation3], 0  ;;  %s1141_s0 = inlined_call_operand.vmem [shape: f32[4,8,16], index: 0, kind: input, shape index: {}]   ;;  %s1142_s1 = inlined_call_operand.hbm [shape: f32[16,32], index: 1, kind: input, shape index: {}]   ;;  %s1143_s2 = inlined_call_operand.hbm [shape: f32[2,32,32], index: 2, kind: input, shape index: {}]   ;;  %s1144_s3 = inlined_call_operand.vmem [shape: f32[32,4], index: 3, kind: input, shape index: {}]   ;;  %s1145_s4 = inlined_call_operand.vmem [shape: f32[7,32], index: 4, kind: input, shape index: {}]   ;;  %s1146_s5 = inlined_call_operand.vmem [shape: f32[4,8,4], index: 5, kind: output, shape index: {}]  }
   0x1   :  { %11 = vsyncpa [#allocation5], 0  ;;  %s1008_s18 = smov 0  }
   0x2 LB: > { %s1014_s19 = sadd.s32 4294967295, %s970_s18   ;;  %p777_p0 = scmp.ge.s32.totalorder %s970_s18, 1  ;;  %s970_s18 = sphi %s1008_s18, %s17_s18  }
   0x3   : > { %p158_p1 = scmp.lt.s32.totalorder %s970_s18, 5  ;;  %s972_s20 = smov [#allocation2]  }
   0x4   : > { %s170_s21 = sshll.u32 %s972_s20, 4  ;;  %p868_p3 = scmp.eq.s32.totalorder %s1014_s19, 0  ;;  %s171_s21 = int_to_ptr.vmem [resolvable:$true] %s170_s21 }
   0x5   : > { %p1018_p2 = pnand %p777_p0, %p158_p1  ;;  %s973_s23 = smov [#allocation4]  }
   0x6   : > { %s183_s24 = sshll.u32 %s973_s23, 4  ;;  %s915_s26 = scalar_lea.vmem %s171_s21, 256  ;;  %s184_s24 = int_to_ptr.vmem [resolvable:$true] %s183_s24 }
   0x7   : > { %p861_p4 = pneg %p1018_p2  ;;  %p916_p7 = scmp.ne.s32.totalorder %s171_s21, %s915_s26 }
   0x8   : > { %p923_p10 = scmp.lt.s32.totalorder %s171_s21, %s171_s21  ;;  %p924_p11 = scmp.lt.s32.totalorder %s915_s26, %s915_s26 }
   0x9   : > { %p1027_p5 = pnand %p868_p3, %p861_p4 }
   0xa   : > { %p925_p12 = por %p924_p11, %p923_p10 }
   0xb   : > { %p906_p6 = pneg %p1027_p5 }
   0xd   : > { %p918_p8 = pnand %p916_p7, %p906_p6 }
   0xf   : > { %p919_p9 = pneg %p918_p8 }
  0x11   : > { %p926_p13 = pnand %p925_p12, %p919_p9 }
  0x13   : > { %929 = shalt.err (!%p926_p13)
}
  0x14   : > { %s974_s27 = smov 128   ;;  %s975_s28 = smov 8  }
  0x15   : > { %864 = dma.hbm_to_vmem [thread:$0]  (!%p1027_p5), %s1142_s1, 256, %s171_s21, [#allocation3], %s974_s27, %s974_s27, %s975_s28  }
  0x16   : > { %s941_s6 = scalar_lea.vmem %s184_s24, 1024  ;;  %p949_p7 = scmp.lt.s32.totalorder %s184_s24, %s184_s24 }
  0x17   : > { %p942_p0 = scmp.ne.s32.totalorder %s184_s24, %s941_s6  ;;  %p950_p8 = scmp.lt.s32.totalorder %s941_s6, %s941_s6 }
  0x19   : > { %p944_p1 = pnand %p942_p0, %p906_p6  ;;  %p951_p10 = por %p950_p8, %p949_p7 }
  0x1b   : > { %p945_p4 = pneg %p944_p1 }
  0x1d   : > { %p952_p9 = pnand %p951_p10, %p945_p4 }
  0x1f   : > { %955 = shalt.err (!%p952_p9)
}
  0x20   : > { %867 = dma.hbm_to_vmem [thread:$0]  (!%p1027_p5), %s1143_s2, 1024, %s184_s24, [#allocation5], %s974_s27, %s974_s27, %s975_s28  }
  0x21   : > { %212 = sbr.rel (%p1018_p2) target bundleno = 1067 (0x42b), region = 40 }
  0x26   : > { %961 = dma.done.wait (%p868_p3), [#allocation3], 256  }
  0x27   : > { %963 = vsyncadd (%p868_p3), [#allocation3], 4294967040 }
  0x28   : > { %965 = dma.done.wait (%p868_p3), [#allocation5], 1024  }
  0x29   : > { %967 = vsyncadd (%p868_p3), [#allocation5], 4294966272  ;;  %p242_p6 = scmp.lt.s32.totalorder %s1014_s19, 3  ;;  %v976_v0 = vmov 0.0   ;;  %vm977_vm0 = vmmov 0   ;;  %v253_v1 = vld [vmem:[#allocation2 + $0x8] sm:$0xff]  ;;  %v356_v30 = vlaneseq }
  0x2a   : > { %813 = vmatprep.subr.mxu0 %v976_v0  ;;  %817 = vmatprep.mubr.msk.f32.mxu0 %vm977_vm0, %v976_v0  ;;  %v252_v2 = vld [vmem:[#allocation2] sm:$0xff]  ;;  %vm254_vm1 = vcmask 130048   ;;  %v376_v4 = vld [vmem:[#allocation4 + $0x18] sm:$0xff]  ;;  %v374_v6 = vld [vmem:[#allocation4 + $0x8] sm:$0xff]  ;;  %vm328_vm2 = vcmask 261120   ;;  %vm698_vm3 = vcmask 31744  }
  0x2b   : > { %s1150_s19 = smov (!%p242_p6, %s1014_s19), 3  ;;  %820 = vmatprep.subr.mxu1 %v976_v0  ;;  %828 = vmatprep.mubr.msk.f32.mxu1 %vm977_vm0, %v976_v0  ;;  %v375_v5 = vld [vmem:[#allocation4 + $0x10] sm:$0xff]  ;;  %v373_v7 = vld [vmem:[#allocation4] sm:$0xff]  ;;  %v1085_v31 = vshrl.u32 %v356_v30, 7  ;;  %v498_v49 = vld [vmem:[#allocation4 + $0x38] sm:$0xff] }
  0x2c   : > { %s784_s9 = sshll.u32 %s1150_s19, 3  ;;  %814 = vmatpush3.msra.mxu0 %v253_v1  ;;  %821 = vmatpush3.msra.mxu1 %v376_v4  ;;  %v1090_v32 = vld [vmem:[%s1145_s4] sm:$0x7f]  ;;  %v496_v51 = vld [vmem:[#allocation4 + $0x28] sm:$0xff]  ;;  %v495_v52 = vld [vmem:[#allocation4 + $0x20] sm:$0xff] }
  0x2d   : > { %s245_s12 = scalar_lea.vmem %s1141_s0, %s784_s9  ;;  %815 = vmatprep.subr.mxu0 %v976_v0  ;;  %822 = vmatprep.subr.mxu1 %v976_v0  ;;  %v358_v35 = vsub.s32 0, %v1085_v31  ;;  %v363_v39 = vsub.s32 1, %v1085_v31  ;;  %v497_v50 = vld [vmem:[#allocation4 + $0x30] sm:$0xff]  ;;  %v617_v30 = vld [vmem:[%s1144_s3 + $0x8] sm:$0xff]  ;;  %s249_s27 = scalar_lea.vmem %s1146_s5, %s784_s9 }
  0x2e   : > { %v251_v3 = vld [vmem:[%s245_s12] sm:$0xff]  ;;  %816 = vmatpush3.msra.mxu0 %v252_v2  ;;  %823 = vmatpush3.msra.mxu1 %v375_v5 }
  0x2f   : > { %818 = vmatmul.mubr.msk.f32.vlgmr.msra.gmra.mxu0 %vm254_vm1, %v251_v3  ;;  %831 = vmatprep.subr.mxu0 %v976_v0 }
  0x30   : > { %839 = vmatprep.mubr.msk.f32.mxu0 %vm977_vm0, %v976_v0  ;;  %824 = vmatprep.subr.mxu1 %v976_v0 }
  0x31   : > { %825 = vmatpush3.msra.mxu1 %v374_v6  ;;  %832 = vmatpush3.msra.mxu0 %v498_v49 }
  0x32   : > { %826 = vmatprep.subr.mxu1 %v976_v0  ;;  %833 = vmatprep.subr.mxu0 %v976_v0 }
  0x33   : > { %827 = vmatpush3.msra.mxu1 %v373_v7  ;;  %834 = vmatpush3.msra.mxu0 %v497_v50 }
  0x34   : > { %842 = vmatprep.subr.mxu1 %v976_v0  ;;  %835 = vmatprep.subr.mxu0 %v976_v0 }
  0x35   : > { %836 = vmatpush3.msra.mxu0 %v496_v51 }
  0x36   : > { %837 = vmatprep.subr.mxu0 %v976_v0 }
  0x37   : > { %838 = vmatpush3.msra.mxu0 %v495_v52 }
  0xef   : > { %v324_v8 = vpop.f32.mrf.mxu0 }
  0xf0   : > { %v329_v9 = vsel %vm328_vm2, %v324_v8, 0.0  ;;  %v336_v10 = vmul.f32 %v324_v8, %v324_v8 }
  0xf1   : > { %v330_v11 = vrot.slane %v329_v9, 4  ;;  %v819_v12 = vpop.f32.mrf.mxu0 }
  0xf2   : > { %v337_v13 = vsel %vm328_vm2, %v336_v10, 0.0 }
  0xf3   : > { %v331_v14 = vadd.f32 %v330_v11, %v329_v9  ;;  %v338_v15 = vrot.slane %v337_v13, 4 }
  0xf5   : > { %v332_v16 = vrot.slane %v331_v14, 2  ;;  %v339_v17 = vadd.f32 %v338_v15, %v337_v13 }
  0xf7   : > { %v333_v18 = vadd.f32 %v332_v16, %v331_v14  ;;  %v340_v19 = vrot.slane %v339_v17, 2  ;;  %v479_v14 = vsub.s32 2, %v1085_v31 }
  0xf9   : > { %v334_v20 = vrot.slane %v333_v18, 1  ;;  %v341_v21 = vadd.f32 %v340_v19, %v339_v17 }
  0xfb   : > { %v335_v22 = vadd.f32 %v334_v20, %v333_v18  ;;  %v342_v23 = vrot.slane %v341_v21, 1  ;;  %v484_v18 = vsub.s32 3, %v1085_v31 }
  0xfd   : > { %v343_v24 = vadd.f32 %v342_v23, %v341_v21  ;;  %v344_v25 = vmul.f32 0.125, %v335_v22 }
  0xff   : > { %v345_v26 = vmul.f32 0.125, %v343_v24  ;;  %v346_v27 = vmul.f32 %v344_v25, %v344_v25 }
 0x101   : > { %v347_v28 = vsub.f32 %v345_v26, %v346_v27 }
 0x103   : > { %v348_v29 = vadd.f32 1e-05, %v347_v28  ;;  %v619_v28 = vld [vmem:[%s1144_s3 + $0x18] sm:$0xff] }
 0x105   : > { %886 = vrsqrt.f32 %v348_v29  ;;  %v618_v29 = vld [vmem:[%s1144_s3 + $0x10] sm:$0xff] }
 0x112   : > { %v887_v33 = vpop.eup %886 }
 0x113   : > { %v350_v34 = vmul.f32 %v887_v33, %v1090_v32  ;;  %v616_v33 = vld [vmem:[%s1144_s3] sm:$0xff] }
 0x115   : > { %v351_v36 = vmul.f32 %v350_v34, %v344_v25  ;;  %v359_v38 = vrot.slane %v350_v34, %v358_v35 }
 0x117   : > { %v353_v37 = vrot.slane %v351_v36, 7  ;;  %v360_v41 = vmul.f32 %v359_v38, %v324_v8 }
 0x119   : > { %v355_v40 = vsub.f32 %v1090_v32, %v353_v37 }
 0x11b   : > { %v364_v42 = vrot.slane %v355_v40, %v363_v39 }
 0x11d   : > { %v365_v43 = vadd.f32 %v364_v42, %v360_v41 }
 0x11f   : > { %v787_v44 = vmul.f32 -1.442695, %v365_v43 }
 0x121   : > { %888 = vpow2.f32 %v787_v44 }
 0x12e   : > { %v889_v45 = vpop.eup %888 }
 0x12f   : > { %v369_v46 = vadd.f32 1.0, %v889_v45 }
 0x131   : > { %890 = vrcp.f32 %v369_v46 }
 0x13e   : > { %v891_v47 = vpop.eup %890 }
 0x13f   : > { %v372_v48 = vmul.f32 %v891_v47, %v365_v43 }
 0x141   : > { %829 = vmatmul.mubr.msk.f32.vlgmr.msra.gmra.mxu1 %vm328_vm2, %v372_v48 }
 0x142   : > { %850 = vmatprep.mubr.msk.f32.mxu1 %vm977_vm0, %v976_v0  ;;  %843 = vmatpush3.msra.mxu1 %v619_v28 }
 0x143   : > { %844 = vmatprep.subr.mxu1 %v976_v0 }
 0x144   : > { %845 = vmatpush3.msra.mxu1 %v618_v29 }
 0x145   : > { %846 = vmatprep.subr.mxu1 %v976_v0 }
 0x146   : > { %847 = vmatpush3.msra.mxu1 %v617_v30 }
 0x147   : > { %848 = vmatprep.subr.mxu1 %v976_v0 }
 0x148   : > { %849 = vmatpush3.msra.mxu1 %v616_v33 }
 0x201   : > { %v446_v53 = vpop.f32.mrf.mxu1 }
 0x202   : > { %v450_v54 = vsel %vm328_vm2, %v446_v53, 0.0  ;;  %v457_v55 = vmul.f32 %v446_v53, %v446_v53 }
 0x203   : > { %v451_v56 = vrot.slane %v450_v54, 4  ;;  %v830_v57 = vpop.f32.mrf.mxu1 }
 0x204   : > { %v458_v58 = vsel %vm328_vm2, %v457_v55, 0.0  ;;  %v601_v57 = vsub.s32 4, %v1085_v31 }
 0x205   : > { %v452_v59 = vadd.f32 %v451_v56, %v450_v54  ;;  %v459_v60 = vrot.slane %v458_v58, 4 }
 0x207   : > { %v453_v61 = vrot.slane %v452_v59, 2  ;;  %v460_v62 = vadd.f32 %v459_v60, %v458_v58 }
 0x209   : > { %v454_v63 = vadd.f32 %v453_v61, %v452_v59  ;;  %v461_v1 = vrot.slane %v460_v62, 2  ;;  %v606_v61 = vsub.s32 5, %v1085_v31 }
 0x20b   : > { %v455_v2 = vrot.slane %v454_v63, 1  ;;  %v462_v3 = vadd.f32 %v461_v1, %v460_v62 }
 0x20d   : > { %v456_v4 = vadd.f32 %v455_v2, %v454_v63  ;;  %v463_v5 = vrot.slane %v462_v3, 1 }
 0x20f   : > { %v464_v6 = vadd.f32 %v463_v5, %v462_v3  ;;  %v465_v7 = vmul.f32 0.125, %v456_v4 }
 0x211   : > { %v466_v8 = vmul.f32 0.125, %v464_v6  ;;  %v467_v9 = vmul.f32 %v465_v7, %v465_v7 }
 0x213   : > { %v468_v10 = vsub.f32 %v466_v8, %v467_v9  ;;  %v622_v8 = vsub.s32 6, %v1085_v31 }
 0x215   : > { %v469_v11 = vadd.f32 1e-05, %v468_v10  ;;  %v623_v9 = vrot.slane %v1090_v32, %v622_v8 }
 0x217   : > { %892 = vrsqrt.f32 %v469_v11 }
 0x224   : > { %v893_v12 = vpop.eup %892 }
 0x225   : > { %v471_v13 = vmul.f32 %v893_v12, %v1090_v32 }
 0x227   : > { %v472_v15 = vmul.f32 %v471_v13, %v465_v7  ;;  %v480_v17 = vrot.slane %v471_v13, %v479_v14 }
 0x229   : > { %v474_v16 = vrot.slane %v472_v15, 7  ;;  %v481_v20 = vmul.f32 %v480_v17, %v446_v53 }
 0x22b   : > { %v476_v19 = vsub.f32 %v1090_v32, %v474_v16 }
 0x22d   : > { %v485_v21 = vrot.slane %v476_v19, %v484_v18 }
 0x22f   : > { %v486_v22 = vadd.f32 %v485_v21, %v481_v20 }
 0x231   : > { %v789_v23 = vmul.f32 -1.442695, %v486_v22 }
 0x233   : > { %894 = vpow2.f32 %v789_v23 }
 0x240   : > { %v895_v24 = vpop.eup %894 }
 0x241   : > { %v490_v25 = vadd.f32 1.0, %v895_v24 }
 0x243   : > { %896 = vrcp.f32 %v490_v25 }
 0x250   : > { %v897_v26 = vpop.eup %896 }
 0x251   : > { %v493_v27 = vmul.f32 %v897_v26, %v486_v22 }
 0x253   : > { %840 = vmatmul.mubr.msk.f32.vlgmr.msra.gmra.mxu0 %vm328_vm2, %v493_v27 }
 0x313   : > { %v568_v34 = vpop.f32.mrf.mxu0 }
 0x314   : > { %v572_v35 = vsel %vm328_vm2, %v568_v34, 0.0  ;;  %v579_v36 = vmul.f32 %v568_v34, %v568_v34 }
 0x315   : > { %v573_v37 = vrot.slane %v572_v35, 4  ;;  %v841_v38 = vpop.f32.mrf.mxu0 }
 0x316   : > { %v580_v39 = vsel %vm328_vm2, %v579_v36, 0.0 }
 0x317   : > { %v574_v40 = vadd.f32 %v573_v37, %v572_v35  ;;  %v581_v41 = vrot.slane %v580_v39, 4 }
 0x319   : > { %v575_v42 = vrot.slane %v574_v40, 2  ;;  %v582_v43 = vadd.f32 %v581_v41, %v580_v39 }
 0x31b   : > { %v576_v44 = vadd.f32 %v575_v42, %v574_v40  ;;  %v583_v45 = vrot.slane %v582_v43, 2 }
 0x31d   : > { %v577_v0 = vrot.slane %v576_v44, 1  ;;  %v584_v46 = vadd.f32 %v583_v45, %v582_v43 }
 0x31f   : > { %v578_v47 = vadd.f32 %v577_v0, %v576_v44  ;;  %v585_v48 = vrot.slane %v584_v46, 1 }
 0x321   : > { %v586_v49 = vadd.f32 %v585_v48, %v584_v46  ;;  %v587_v50 = vmul.f32 0.125, %v578_v47 }
 0x323   : > { %v588_v51 = vmul.f32 0.125, %v586_v49  ;;  %v589_v52 = vmul.f32 %v587_v50, %v587_v50 }
 0x325   : > { %v590_v53 = vsub.f32 %v588_v51, %v589_v52 }
 0x327   : > { %v591_v54 = vadd.f32 1e-05, %v590_v53 }
 0x329   : > { %898 = vrsqrt.f32 %v591_v54 }
 0x336   : > { %v899_v55 = vpop.eup %898 }
 0x337   : > { %v593_v56 = vmul.f32 %v899_v55, %v1090_v32 }
 0x339   : > { %v594_v58 = vmul.f32 %v593_v56, %v587_v50  ;;  %v602_v60 = vrot.slane %v593_v56, %v601_v57 }
 0x33b   : > { %v596_v59 = vrot.slane %v594_v58, 7  ;;  %v603_v63 = vmul.f32 %v602_v60, %v568_v34 }
 0x33d   : > { %v598_v62 = vsub.f32 %v1090_v32, %v596_v59 }
 0x33f   : > { %v607_v1 = vrot.slane %v598_v62, %v606_v61 }
 0x341   : > { %v608_v2 = vadd.f32 %v607_v1, %v603_v63 }
 0x343   : > { %v791_v3 = vmul.f32 -1.442695, %v608_v2 }
 0x345   : > { %900 = vpow2.f32 %v791_v3 }
 0x352   : > { %v901_v4 = vpop.eup %900 }
 0x353   : > { %v612_v5 = vadd.f32 1.0, %v901_v4 }
 0x355   : > { %902 = vrcp.f32 %v612_v5 }
 0x362   : > { %v903_v6 = vpop.eup %902 }
 0x363   : > { %v615_v7 = vmul.f32 %v903_v6, %v608_v2 }
 0x365   : > { %851 = vmatmul.mubr.msk.f32.vlgmr.msra.gmra.mxu1 %vm328_vm2, %v615_v7 }
 0x425   : > { %v693_v10 = vpop.f32.mrf.mxu1 }
 0x426   : > { %v694_v11 = vadd.f32 %v693_v10, %v623_v9 }
 0x427   : > { %v852_v12 = vpop.f32.mrf.mxu1 }
 0x428   : > { %v697_v13 = vmax.f32 %v694_v11, 0.0 }
 0x42a   : > { %699 = vst.msk [vmem:[%s249_s27] sm:$0xff] %vm698_vm3, %v697_v13 }
 0x42b PF: > { %s17_s18 = sadd.s32 1, %s970_s18  }
 0x42c   : > { %p14_p2 = scmp.ge.s32.totalorder %s17_s18, 6  }
 0x42e   :  { %16 = sbr.rel (!%p14_p2) target bundleno = 2 (0x2), region = 80 }
 0x433   :  { %719 = vsyncpa [#allocation3], 1 }
 0x434   :  { %721 = vsyncpa [#allocation3 + $0x1], 1 }
 0x435   :  { %722 = vsyncpa [#allocation5], 1 }

</bundles_post_ra>
